<compile_context>
chip_gen: v7x
topology: tpu7x:2x2x1
jax: 0.10.0
libtpu: 0.0.40
codegen_flags: <defaults>
</compile_context>

<pallas_src>
import math
import functools

import jax
import jax.numpy as jnp
from jax.experimental import pallas as pl
from jax.experimental.pallas import tpu as pltpu


# ------------------------------- kernel ------------------------------------


def _mish(x):
    # x * tanh(softplus(x));  tanh(softplus(x)) == ((1+e^x)^2 - 1)/((1+e^x)^2 + 1)
    # -> one EUP exp + one approx reciprocal instead of exp + log1p + tanh.
    e = jnp.exp(jnp.minimum(x, 20.0))          # clamp: for x>20, tanh(softplus)≈1
    p = (1.0 + e) * (1.0 + e)
    return x * (p - 1.0) * pl.reciprocal(p + 1.0, approx=True)


def mlp_time_kernel(offsets, acts, time_ref, x_ref, freqs_ref,
                    tw1s_ref, tw1c_ref, tb1_ref,
                    slab_w_ref, slab_b_ref, *rest):
    """Fused forward for one batch tile.

    offsets: static tuple of (lane_offset, width) into the fused t-projection
             slab, one entry per layer (all multiples of 128).
    acts:    static tuple of bools; True -> ReLU after that layer.
    """
    wx_refs = rest[:-1]
    o_ref = rest[-1]

    bf16 = jnp.bfloat16
    f32 = jnp.float32

    # ---- SinusoidalPosEmb fused in-kernel -----------------------------------
    args = time_ref[...] * freqs_ref[...]                     # (tile_b, half) f32
    # emb = [sin(args), cos(args)]; concat avoided by pre-splitting W1.
    h = (jnp.dot(jnp.sin(args).astype(bf16), tw1s_ref[...],
                 preferred_element_type=f32)
         + jnp.dot(jnp.cos(args).astype(bf16), tw1c_ref[...],
                   preferred_element_type=f32)
         + tb1_ref[...])
    h = _mish(h)

    # ---- fused (time-MLP Linear2 + per-layer t-projections + biases) --------
    # t_all[:, off:off+w] == (time_mlp(time)) @ Wt_layer + b_layer
    t_all = jnp.dot(h.astype(bf16), slab_w_ref[...],
                    preferred_element_type=f32) + slab_b_ref[...]

    # ---- MLP trunk: x = act(x @ Wx + t_all[:, seg]) --------------------------
    x = x_ref[...]
    for li, (off, width) in enumerate(offsets):
        x = (jnp.dot(x.astype(bf16), wx_refs[li][...],
                     preferred_element_type=f32)
             + t_all[:, off:off + width])                     # lane-aligned slice
        if acts[li]:
            x = jnp.maximum(x, 0.0)                           # activation = nn.ReLU

    o_ref[...] = x.astype(o_ref.dtype)                        # lane-dense store


# ------------------------------ JAX glue ------------------------------------


def _round_up(v, m):
    return ((v + m - 1) // m) * m


def sinusoidal_pos_emb(time, dim):
    """SinusoidalPosEmb (reference path): time (B,) -> (B, dim)."""
    half = dim // 2
    scale = math.log(10000.0) / (half - 1)
    freqs = jnp.exp(jnp.arange(half, dtype=jnp.float32) * -scale)
    args = time[:, None] * freqs[None, :]
    return jnp.concatenate([jnp.sin(args), jnp.cos(args)], axis=-1)


def _init_linear(key, fan_in, fan_out):
    """PyTorch nn.Linear default init, weights stored (in, out)."""
    kw, kb = jax.random.split(key)
    bound = 1.0 / math.sqrt(fan_in)
    w = jax.random.uniform(kw, (fan_in, fan_out), jnp.float32, -bound, bound)
    b = jax.random.uniform(kb, (1, fan_out), jnp.float32, -bound, bound)
    return w, b


def init_params(key, input_dim, hidden_dims, time_dim, output_dim):
    keys = jax.random.split(key, 2 + len(hidden_dims) + 1)

    # time_mlp: Linear(time_dim, 4*time_dim) -> Mish -> Linear(4*time_dim, time_dim)
    tw1, tb1 = _init_linear(keys[0], time_dim, 4 * time_dim)
    tw2, tb2 = _init_linear(keys[1], 4 * time_dim, time_dim)

    layers = []
    x_dim = input_dim
    for i, h in enumerate(hidden_dims):
        out_dim_i = h + time_dim                      # per __init__: out_dim + time_dim
        fan_in = x_dim + time_dim                     # cat([x, t], -1)
        w, b = _init_linear(keys[2 + i], fan_in, out_dim_i)
        layers.append((w[:x_dim, :], w[x_dim:, :], b))  # split W -> (Wx, Wt)
        x_dim = out_dim_i

    final = None
    if output_dim is not None:
        fan_in = x_dim + time_dim
        w, b = _init_linear(keys[2 + len(hidden_dims)], fan_in, output_dim)
        final = (w[:x_dim, :], w[x_dim:, :], b)

    return dict(tw1=tw1, tb1=tb1, tw2=tw2, tb2=tb2, layers=layers, final=final)


def prepare_mlp_time(params, input_dim, time_dim):
    """One-time weight prep (pad / concat / fold / bf16-cast) — hoisted out of
    the per-call forward path."""
    bf16, f32 = jnp.bfloat16, jnp.float32

    layers = list(params["layers"])
    acts = [True] * len(layers)
    if params["final"] is not None:
        layers.append(params["final"])
        acts.append(False)

    out_feat = int(layers[-1][2].shape[-1])

    # Pad every layer's output width (and the next layer's input rows) to a
    # multiple of 128 so all slab offsets / stores are lane-aligned. The
    # padded columns carry zero weights + zero bias, so ReLU keeps them 0 and
    # they have no effect downstream.
    wx_list, wt_list, b_list, widths = [], [], [], []
    in_width = int(input_dim)
    for wx, wt, b in layers:
        true_in = wx.shape[0]
        true_out = b.shape[-1]
        out_p = _round_up(true_out, 128)
        if in_width != true_in:                       # previous layer was padded
            wx = jnp.pad(wx, ((0, in_width - true_in), (0, 0)))
        if out_p != true_out:
            wx = jnp.pad(wx, ((0, 0), (0, out_p - true_out)))
            wt = jnp.pad(wt, ((0, 0), (0, out_p - true_out)))
            b = jnp.pad(b, ((0, 0), (0, out_p - true_out)))
        wx_list.append(wx)
        wt_list.append(wt)
        b_list.append(b)
        widths.append(out_p)
        in_width = out_p

    offsets, off = [], 0
    for w in widths:
        offsets.append((off, w))
        off += w

    # Fused t-projection slab with the time-MLP second Linear folded in (f32):
    #   t_all = mish(h) @ (tw2 @ [Wt_1|...|Wt_L]) + (tb2 @ [Wt_1|...] + [b_1|...])
    slab_w = jnp.concatenate(wt_list, axis=-1).astype(f32)     # (time_dim, total)
    slab_b = jnp.concatenate(b_list, axis=-1).astype(f32)      # (1, total)
    w_fused = params["tw2"].astype(f32) @ slab_w               # (4*time_dim, total)
    b_fused = params["tb2"].astype(f32) @ slab_w + slab_b      # (1, total)

    # SinusoidalPosEmb constants + first time-MLP Linear split into sin/cos halves.
    half = time_dim // 2
    scale = math.log(10000.0) / (half - 1)
    freqs = jnp.exp(jnp.arange(half, dtype=f32) * -scale)[None, :]   # (1, half)

    return dict(
        freqs=freqs,
        tw1_sin=params["tw1"][:half, :].astype(bf16),
        tw1_cos=params["tw1"][half:, :].astype(bf16),
        tb1=params["tb1"].astype(f32),
        slab_w=w_fused.astype(bf16),
        slab_b=b_fused,
        wx=tuple(w.astype(bf16) for w in wx_list),
        offsets=tuple(offsets),
        acts=tuple(acts),
        input_dim=int(input_dim),
        time_dim=int(time_dim),
        out_feat=out_feat,
        out_pad=int(widths[-1]),
    )


def mlp_time_forward(prepared, x, time, tile_b=1024, out_dtype=jnp.float32):
    B = x.shape[0]
    input_dim = prepared["input_dim"]
    out_pad = prepared["out_pad"]

    x = x.astype(jnp.float32)
    time2d = jnp.reshape(time.astype(jnp.float32), (B, 1))

    # ---- batch tiling: tile = cdiv(B, num_tiles) (no wasted padded rows);
    # ---- force >= 2 tiles for large B so "parallel" can feed both v7x TCs.
    num_tiles = max(1, -(-B // max(8, tile_b)))
    if B >= 1024:
        num_tiles = max(2, num_tiles)
    tb = _round_up(-(-B // num_tiles), 8)
    b_padded = num_tiles * tb
    if b_padded != B:
        x = jnp.pad(x, ((0, b_padded - B), (0, 0)))
        time2d = jnp.pad(time2d, ((0, b_padded - B), (0, 0)))

    kernel = functools.partial(mlp_time_kernel,
                               prepared["offsets"], prepared["acts"])

    weights = (prepared["freqs"], prepared["tw1_sin"], prepared["tw1_cos"],
               prepared["tb1"], prepared["slab_w"], prepared["slab_b"],
               *prepared["wx"])

    def resident(arr):
        # full-size block, same block every grid step -> stays VMEM-resident
        return pl.BlockSpec(arr.shape, lambda i: (0, 0))

    in_specs = [
        pl.BlockSpec((tb, 1), lambda i: (i, 0)),            # time (tile_b, 1)
        pl.BlockSpec((tb, input_dim), lambda i: (i, 0)),    # x
    ] + [resident(w) for w in weights]

    out = pl.pallas_call(
        kernel,
        out_shape=jax.ShapeDtypeStruct((b_padded, out_pad), out_dtype),
        grid=(num_tiles,),
        in_specs=in_specs,
        out_specs=pl.BlockSpec((tb, out_pad), lambda i: (i, 0)),
        compiler_params=pltpu.CompilerParams(
            dimension_semantics=("parallel",),
            vmem_limit_bytes=32 * 1024 * 1024,
        ),
    )(time2d, x, *weights)

    return out[:B, :prepared["out_feat"]]


# ------------------------- pure-JAX reference --------------------------------


def mlp_time_reference(params, x, time, time_dim):
    emb = sinusoidal_pos_emb(time, time_dim)
    h = emb @ params["tw1"] + params["tb1"]
    sp = jnp.maximum(h, 0.0) + jnp.log1p(jnp.exp(-jnp.abs(h)))   # softplus
    h = h * jnp.tanh(sp)                                          # Mish
    t = h @ params["tw2"] + params["tb2"]
    for wx, wt, b in params["layers"]:
        x = jnp.maximum(x @ wx + t @ wt + b, 0.0)
    if params["final"] is not None:
        wx, wt, b = params["final"]
        x = x @ wx + t @ wt + b
    return x


# -------------------------------- main --------------------------------------


if __name__ == "__main__":
    B = 8
    input_dim = 16
    hidden_dims = [32, 32]
    time_dim = 32
    output_dim = 8

    key = jax.random.PRNGKey(0)
    kx, kt, kp = jax.random.split(key, 3)
    x = jax.random.normal(kx, (B, input_dim), dtype=jnp.float32)
    time = jax.random.uniform(kt, (B,), dtype=jnp.float32)

    params = init_params(kp, input_dim, hidden_dims, time_dim, output_dim)
    prepared = prepare_mlp_time(params, input_dim, time_dim)   # one-time prep

    out = mlp_time_forward(prepared, x, time)
    out = jax.block_until_ready(out)

    assert out.shape == (B, output_dim), out.shape
    assert bool(jnp.all(jnp.isfinite(out)))

    ref = mlp_time_reference(params, x, time, time_dim)
    assert bool(jnp.allclose(out, ref, rtol=5e-2, atol=5e-2)), \
        float(jnp.max(jnp.abs(out - ref)))

    print("KERNEL_OK")
</pallas_src>

<mosaic_0001>
module attributes {stable_mosaic.version = 11 : i64} {
  func.func @mlp_time_kernel(%arg0: i32, %arg1: memref<8x1xf32, #tpu.memory_space<vmem>>, %arg2: memref<8x16xf32, #tpu.memory_space<vmem>>, %arg3: memref<1x16xf32, #tpu.memory_space<vmem>>, %arg4: memref<16x128xbf16, #tpu.memory_space<vmem>>, %arg5: memref<16x128xbf16, #tpu.memory_space<vmem>>, %arg6: memref<1x128xf32, #tpu.memory_space<vmem>>, %arg7: memref<128x384xbf16, #tpu.memory_space<vmem>>, %arg8: memref<1x384xf32, #tpu.memory_space<vmem>>, %arg9: memref<16x128xbf16, #tpu.memory_space<vmem>>, %arg10: memref<128x128xbf16, #tpu.memory_space<vmem>>, %arg11: memref<128x128xbf16, #tpu.memory_space<vmem>>, %arg12: memref<8x128xf32, #tpu.memory_space<vmem>>) attributes {dimension_semantics = [#tpu.dimension_semantics<parallel>], iteration_bounds = array<i64: 1>, scalar_prefetch = 0 : i64, scratch_operands = 0 : i64, tpu.core_type = #tpu.core_type<tc>, window_params = [{transform_indices = @transform_0, window_bounds = array<i64: 8, 1>}, {transform_indices = @transform_1, window_bounds = array<i64: 8, 16>}, {pipeline_mode = #tpu.pipeline_mode<synchronous>, transform_indices = @transform_2, window_bounds = array<i64: 1, 16>}, {pipeline_mode = #tpu.pipeline_mode<synchronous>, transform_indices = @transform_3, window_bounds = array<i64: 16, 128>}, {pipeline_mode = #tpu.pipeline_mode<synchronous>, transform_indices = @transform_4, window_bounds = array<i64: 16, 128>}, {pipeline_mode = #tpu.pipeline_mode<synchronous>, transform_indices = @transform_5, window_bounds = array<i64: 1, 128>}, {pipeline_mode = #tpu.pipeline_mode<synchronous>, transform_indices = @transform_6, window_bounds = array<i64: 128, 384>}, {pipeline_mode = #tpu.pipeline_mode<synchronous>, transform_indices = @transform_7, window_bounds = array<i64: 1, 384>}, {pipeline_mode = #tpu.pipeline_mode<synchronous>, transform_indices = @transform_8, window_bounds = array<i64: 16, 128>}, {pipeline_mode = #tpu.pipeline_mode<synchronous>, transform_indices = @transform_9, window_bounds = array<i64: 128, 128>}, {pipeline_mode = #tpu.pipeline_mode<synchronous>, transform_indices = @transform_10, window_bounds = array<i64: 128, 128>}, {transform_indices = @transform_11, window_bounds = array<i64: 8, 128>}]} {
    %c0 = arith.constant 0 : index
    %c0_0 = arith.constant 0 : index
    %0 = vector.load %arg1[%c0, %c0_0] : memref<8x1xf32, #tpu.memory_space<vmem>>, vector<8x1xf32>
    %c0_1 = arith.constant 0 : index
    %c0_2 = arith.constant 0 : index
    %1 = vector.load %arg3[%c0_1, %c0_2] : memref<1x16xf32, #tpu.memory_space<vmem>>, vector<1x16xf32>
    %2 = vector.broadcast %0 : vector<8x1xf32> to vector<8x16xf32>
    %3 = vector.broadcast %1 : vector<1x16xf32> to vector<8x16xf32>
    %4 = arith.mulf %2, %3 : vector<8x16xf32>
    %5 = math.sin %4 : vector<8x16xf32>
    %6 = arith.truncf %5 : vector<8x16xf32> to vector<8x16xbf16>
    %c0_3 = arith.constant 0 : index
    %c0_4 = arith.constant 0 : index
    %7 = vector.load %arg4[%c0_3, %c0_4] : memref<16x128xbf16, #tpu.memory_space<vmem>>, vector<16x128xbf16>
    %cst = arith.constant dense<0.000000e+00> : vector<8x128xf32>
    %8 = tpu.matmul %6, %7, %cst {dimension_numbers = #tpu.dot_dimension_numbers<[1], [0], [0], [1], [0, 0, 1, 1], [], []>} : vector<8x16xbf16>, vector<16x128xbf16>, vector<8x128xf32> -> vector<8x128xf32>
    %9 = math.cos %4 : vector<8x16xf32>
    %10 = arith.truncf %9 : vector<8x16xf32> to vector<8x16xbf16>
    %c0_5 = arith.constant 0 : index
    %c0_6 = arith.constant 0 : index
    %11 = vector.load %arg5[%c0_5, %c0_6] : memref<16x128xbf16, #tpu.memory_space<vmem>>, vector<16x128xbf16>
    %cst_7 = arith.constant dense<0.000000e+00> : vector<8x128xf32>
    %12 = tpu.matmul %10, %11, %cst_7 {dimension_numbers = #tpu.dot_dimension_numbers<[1], [0], [0], [1], [0, 0, 1, 1], [], []>} : vector<8x16xbf16>, vector<16x128xbf16>, vector<8x128xf32> -> vector<8x128xf32>
    %13 = arith.addf %8, %12 : vector<8x128xf32>
    %c0_8 = arith.constant 0 : index
    %c0_9 = arith.constant 0 : index
    %14 = vector.load %arg6[%c0_8, %c0_9] : memref<1x128xf32, #tpu.memory_space<vmem>>, vector<1x128xf32>
    %15 = vector.broadcast %14 : vector<1x128xf32> to vector<8x128xf32>
    %16 = arith.addf %13, %15 : vector<8x128xf32>
    %cst_10 = arith.constant 2.000000e+01 : f32
    %17 = vector.broadcast %cst_10 : f32 to vector<8x128xf32>
    %18 = arith.minimumf %16, %17 : vector<8x128xf32>
    %19 = math.exp %18 : vector<8x128xf32>
    %cst_11 = arith.constant 1.000000e+00 : f32
    %20 = vector.broadcast %cst_11 : f32 to vector<8x128xf32>
    %21 = arith.addf %20, %19 : vector<8x128xf32>
    %cst_12 = arith.constant 1.000000e+00 : f32
    %22 = vector.broadcast %cst_12 : f32 to vector<8x128xf32>
    %23 = arith.addf %22, %19 : vector<8x128xf32>
    %24 = arith.mulf %21, %23 : vector<8x128xf32>
    %cst_13 = arith.constant 1.000000e+00 : f32
    %25 = vector.broadcast %cst_13 : f32 to vector<8x128xf32>
    %26 = arith.subf %24, %25 : vector<8x128xf32>
    %27 = arith.mulf %16, %26 : vector<8x128xf32>
    %cst_14 = arith.constant 1.000000e+00 : f32
    %28 = vector.broadcast %cst_14 : f32 to vector<8x128xf32>
    %29 = arith.addf %24, %28 : vector<8x128xf32>
    %30 = tpu.reciprocal %29 {approx = true} : vector<8x128xf32> -> vector<8x128xf32>
    %31 = arith.mulf %27, %30 : vector<8x128xf32>
    %32 = arith.truncf %31 : vector<8x128xf32> to vector<8x128xbf16>
    %c0_15 = arith.constant 0 : index
    %c0_16 = arith.constant 0 : index
    %33 = vector.load %arg7[%c0_15, %c0_16] : memref<128x384xbf16, #tpu.memory_space<vmem>>, vector<128x384xbf16>
    %cst_17 = arith.constant dense<0.000000e+00> : vector<8x384xf32>
    %34 = tpu.matmul %32, %33, %cst_17 {dimension_numbers = #tpu.dot_dimension_numbers<[1], [0], [0], [1], [0, 0, 1, 1], [], []>} : vector<8x128xbf16>, vector<128x384xbf16>, vector<8x384xf32> -> vector<8x384xf32>
    %c0_18 = arith.constant 0 : index
    %c0_19 = arith.constant 0 : index
    %35 = vector.load %arg8[%c0_18, %c0_19] : memref<1x384xf32, #tpu.memory_space<vmem>>, vector<1x384xf32>
    %36 = vector.broadcast %35 : vector<1x384xf32> to vector<8x384xf32>
    %37 = arith.addf %34, %36 : vector<8x384xf32>
    %c0_20 = arith.constant 0 : index
    %c0_21 = arith.constant 0 : index
    %38 = vector.load %arg2[%c0_20, %c0_21] : memref<8x16xf32, #tpu.memory_space<vmem>>, vector<8x16xf32>
    %39 = arith.truncf %38 : vector<8x16xf32> to vector<8x16xbf16>
    %c0_22 = arith.constant 0 : index
    %c0_23 = arith.constant 0 : index
    %40 = vector.load %arg9[%c0_22, %c0_23] : memref<16x128xbf16, #tpu.memory_space<vmem>>, vector<16x128xbf16>
    %cst_24 = arith.constant dense<0.000000e+00> : vector<8x128xf32>
    %41 = tpu.matmul %39, %40, %cst_24 {dimension_numbers = #tpu.dot_dimension_numbers<[1], [0], [0], [1], [0, 0, 1, 1], [], []>} : vector<8x16xbf16>, vector<16x128xbf16>, vector<8x128xf32> -> vector<8x128xf32>
    %42 = vector.extract_strided_slice %37 {offsets = [0, 0], sizes = [8, 128], strides = [1, 1]} : vector<8x384xf32> to vector<8x128xf32>
    %43 = arith.addf %41, %42 : vector<8x128xf32>
    %cst_25 = arith.constant 0.000000e+00 : f32
    %44 = vector.broadcast %cst_25 : f32 to vector<8x128xf32>
    %45 = arith.maximumf %43, %44 : vector<8x128xf32>
    %46 = arith.truncf %45 : vector<8x128xf32> to vector<8x128xbf16>
    %c0_26 = arith.constant 0 : index
    %c0_27 = arith.constant 0 : index
    %47 = vector.load %arg10[%c0_26, %c0_27] : memref<128x128xbf16, #tpu.memory_space<vmem>>, vector<128x128xbf16>
    %cst_28 = arith.constant dense<0.000000e+00> : vector<8x128xf32>
    %48 = tpu.matmul %46, %47, %cst_28 {dimension_numbers = #tpu.dot_dimension_numbers<[1], [0], [0], [1], [0, 0, 1, 1], [], []>} : vector<8x128xbf16>, vector<128x128xbf16>, vector<8x128xf32> -> vector<8x128xf32>
    %49 = vector.extract_strided_slice %37 {offsets = [0, 128], sizes = [8, 128], strides = [1, 1]} : vector<8x384xf32> to vector<8x128xf32>
    %50 = arith.addf %48, %49 : vector<8x128xf32>
    %cst_29 = arith.constant 0.000000e+00 : f32
    %51 = vector.broadcast %cst_29 : f32 to vector<8x128xf32>
    %52 = arith.maximumf %50, %51 : vector<8x128xf32>
    %53 = arith.truncf %52 : vector<8x128xf32> to vector<8x128xbf16>
    %c0_30 = arith.constant 0 : index
    %c0_31 = arith.constant 0 : index
    %54 = vector.load %arg11[%c0_30, %c0_31] : memref<128x128xbf16, #tpu.memory_space<vmem>>, vector<128x128xbf16>
    %cst_32 = arith.constant dense<0.000000e+00> : vector<8x128xf32>
    %55 = tpu.matmul %53, %54, %cst_32 {dimension_numbers = #tpu.dot_dimension_numbers<[1], [0], [0], [1], [0, 0, 1, 1], [], []>} : vector<8x128xbf16>, vector<128x128xbf16>, vector<8x128xf32> -> vector<8x128xf32>
    %56 = vector.extract_strided_slice %37 {offsets = [0, 256], sizes = [8, 128], strides = [1, 1]} : vector<8x384xf32> to vector<8x128xf32>
    %57 = arith.addf %55, %56 : vector<8x128xf32>
    %c0_33 = arith.constant 0 : index
    %c0_34 = arith.constant 0 : index
    %58 = vector.load %arg12[%c0_33, %c0_34] : memref<8x128xf32, #tpu.memory_space<vmem>>, vector<8x128xf32>
    tpu.vector_store %arg12[%c0_33, %c0_34], %57 {strides = array<i32>} : memref<8x128xf32, #tpu.memory_space<vmem>>, vector<8x128xf32>,
    return
  }
  func.func @transform_0(%arg0: i32) -> (i32, i32) {
    %c0_i32 = arith.constant 0 : i32
    %c0_i32_0 = arith.constant 0 : i32
    return %arg0, %c0_i32 : i32, i32
  }
  func.func @transform_1(%arg0: i32) -> (i32, i32) {
    %c0_i32 = arith.constant 0 : i32
    %c0_i32_0 = arith.constant 0 : i32
    return %arg0, %c0_i32 : i32, i32
  }
  func.func @transform_2(%arg0: i32) -> (i32, i32) {
    %c0_i32 = arith.constant 0 : i32
    %c0_i32_0 = arith.constant 0 : i32
    %c0_i32_1 = arith.constant 0 : i32
    return %c0_i32, %c0_i32_0 : i32, i32
  }
  func.func @transform_3(%arg0: i32) -> (i32, i32) {
    %c0_i32 = arith.constant 0 : i32
    %c0_i32_0 = arith.constant 0 : i32
    %c0_i32_1 = arith.constant 0 : i32
    return %c0_i32, %c0_i32_0 : i32, i32
  }
  func.func @transform_4(%arg0: i32) -> (i32, i32) {
    %c0_i32 = arith.constant 0 : i32
    %c0_i32_0 = arith.constant 0 : i32
    %c0_i32_1 = arith.constant 0 : i32
    return %c0_i32, %c0_i32_0 : i32, i32
  }
  func.func @transform_5(%arg0: i32) -> (i32, i32) {
    %c0_i32 = arith.constant 0 : i32
    %c0_i32_0 = arith.constant 0 : i32
    %c0_i32_1 = arith.constant 0 : i32
    return %c0_i32, %c0_i32_0 : i32, i32
  }
  func.func @transform_6(%arg0: i32) -> (i32, i32) {
    %c0_i32 = arith.constant 0 : i32
    %c0_i32_0 = arith.constant 0 : i32
    %c0_i32_1 = arith.constant 0 : i32
    return %c0_i32, %c0_i32_0 : i32, i32
  }
  func.func @transform_7(%arg0: i32) -> (i32, i32) {
    %c0_i32 = arith.constant 0 : i32
    %c0_i32_0 = arith.constant 0 : i32
    %c0_i32_1 = arith.constant 0 : i32
    return %c0_i32, %c0_i32_0 : i32, i32
  }
  func.func @transform_8(%arg0: i32) -> (i32, i32) {
    %c0_i32 = arith.constant 0 : i32
    %c0_i32_0 = arith.constant 0 : i32
    %c0_i32_1 = arith.constant 0 : i32
    return %c0_i32, %c0_i32_0 : i32, i32
  }
  func.func @transform_9(%arg0: i32) -> (i32, i32) {
    %c0_i32 = arith.constant 0 : i32
    %c0_i32_0 = arith.constant 0 : i32
    %c0_i32_1 = arith.constant 0 : i32
    return %c0_i32, %c0_i32_0 : i32, i32
  }
  func.func @transform_10(%arg0: i32) -> (i32, i32) {
    %c0_i32 = arith.constant 0 : i32
    %c0_i32_0 = arith.constant 0 : i32
    %c0_i32_1 = arith.constant 0 : i32
    return %c0_i32, %c0_i32_0 : i32, i32
  }
  func.func @transform_11(%arg0: i32) -> (i32, i32) {
    %c0_i32 = arith.constant 0 : i32
    %c0_i32_0 = arith.constant 0 : i32
    return %arg0, %c0_i32 : i32, i32
  }
}

</mosaic_0001>

<bundles_post_ra>
// kernel: tpu_custom_call.1
= control target key start
LH: loop header
LB: loop body
LE: loop exit
PB: predicated region body
PF: predicated region fallthrough
CT: control target
= control target key end

     0   :  { %16 = vsyncpa [#allocation3], 0  ;;  %s1637_s0 = inlined_call_operand.vmem [shape: f32[8,1], index: 0, kind: input, shape index: {}]   ;;  %s1638_s1 = inlined_call_operand.vmem [shape: f32[8,16], index: 1, kind: input, shape index: {}]   ;;  %s1639_s2 = inlined_call_operand.hbm [shape: f32[1,16], index: 2, kind: input, shape index: {}]   ;;  %s1640_s3 = inlined_call_operand.vmem [shape: bf16[16,128], index: 3, kind: input, shape index: {}]   ;;  %s1641_s4 = inlined_call_operand.vmem [shape: bf16[16,128], index: 4, kind: input, shape index: {}]   ;;  %s1642_s5 = inlined_call_operand.hbm [shape: f32[1,128], index: 5, kind: input, shape index: {}]   ;;  %s1643_s6 = inlined_call_operand.hbm [shape: bf16[128,384], index: 6, kind: input, shape index: {}]   ;;  %s1644_s7 = inlined_call_operand.vmem [shape: f32[1,384], index: 7, kind: input, shape index: {}]   ;;  %s1645_s8 = inlined_call_operand.vmem [shape: bf16[16,128], index: 8, kind: input, shape index: {}]   ;;  %s1646_s9 = inlined_call_operand.hbm [shape: bf16[128,128], index: 9, kind: input, shape index: {}]   ;;  %s1647_s10 = inlined_call_operand.hbm [shape: bf16[128,128], index: 10, kind: input, shape index: {}]   ;;  %s1648_s11 = inlined_call_operand.hbm [shape: f32[8,128], index: 11, kind: output, shape index: {}]  }
   0x1   :  { %17 = vsyncpa [#allocation6], 0 }
   0x2   :  { %18 = vsyncpa [#allocation9], 0 }
   0x3   :  { %19 = vsyncpa [#allocation4], 0  ;;  %s1383_s17 = smov [#allocation5]   ;;  %s1384_s19 = smov [#allocation8]  }
   0x4   :  { %s44_s18 = sshll.u32 %s1383_s17, 4  ;;  %s69_s20 = sshll.u32 %s1384_s19, 4  ;;  %s45_s18 = int_to_ptr.vmem [resolvable:$true] %s44_s18  ;;  %s1462_s20 = int_to_ptr.vmem [resolvable:$true] %s69_s20 }
   0x5   :  { %s1243_s23 = scalar_lea.hbm %s1642_s5, 16 }
   0x6   :  { %p1244_p0 = scmp.ne.s32.totalorder %s1642_s5, %s1243_s23  ;;  %p1247_p1 = scmp.lt.u32.totalorder %s1243_s23, %s1642_s5 }
   0x8   :  { %p1249_p2 = pnand %p1247_p1, %p1244_p0 }
   0xa   :  { %1252 = shalt.err (!%p1249_p2)
}
   0xb   :  { %s1253_s28 = scalar_lea.vmem %s45_s18, 16  ;;  %s1257_s29 = scalar_lea.vmem %s45_s18, 32 }
   0xc   :  { %p1254_p3 = scmp.ne.s32.totalorder %s45_s18, %s1253_s28  ;;  %p1258_p4 = scmp.lt.s32.totalorder %s45_s18, %s45_s18 }
   0xd   :  { %p1259_p5 = scmp.lt.s32.totalorder %s1257_s29, %s1253_s28 }
   0xf   :  { %p1260_p6 = por %p1259_p5, %p1258_p4 }
  0x11   :  { %p1261_p7 = pnand %p1260_p6, %p1254_p3 }
  0x13   :  { %1264 = shalt.err (!%p1261_p7)
}
  0x14   :  { %47 = dma.hbm_to_vmem [thread:$0]  %s1642_s5, 16, %s45_s18, [#allocation6]  }
  0x15   :  { %s1265_s15 = scalar_lea.hbm %s1646_s9, 1024 }
  0x16   :  { %p1266_p8 = scmp.ne.s32.totalorder %s1646_s9, %s1265_s15  ;;  %p1269_p9 = scmp.lt.u32.totalorder %s1265_s15, %s1646_s9 }
  0x18   :  { %p1271_p10 = pnand %p1269_p9, %p1266_p8 }
  0x1a   :  { %1274 = shalt.err (!%p1271_p10)
}
  0x1b   :  { %s1275_s22 = scalar_lea.vmem %s1462_s20, 1024  ;;  %p1280_p12 = scmp.lt.s32.totalorder %s1462_s20, %s1462_s20 }
  0x1c   :  { %p1276_p11 = scmp.ne.s32.totalorder %s1462_s20, %s1275_s22  ;;  %p1281_p13 = scmp.lt.s32.totalorder %s1275_s22, %s1275_s22 }
  0x1e   :  { %p1282_p0 = por %p1281_p13, %p1280_p12 }
  0x20   :  { %p1283_p1 = pnand %p1282_p0, %p1276_p11 }
  0x22   :  { %1286 = shalt.err (!%p1283_p1)
}
  0x23   :  { %s1385_s5 = smov 64   ;;  %s1386_s18 = smov 4  }
  0x24   :  { %75 = dma.hbm_to_vmem [thread:$0]  %s1646_s9, 1024, %s1462_s20, [#allocation9], %s1385_s5, %s1385_s5, %s1386_s18  }
  0x25   :  { %s1387_s25 = smov [#allocation2]   ;;  %s1388_s27 = smov [#allocation7]  }
  0x26   :  { %s30_s26 = sshll.u32 %s1387_s25, 4  ;;  %s53_s28 = sshll.u32 %s1388_s27, 4  ;;  %s31_s26 = int_to_ptr.vmem [resolvable:$true] %s30_s26  ;;  %s1496_s28 = int_to_ptr.vmem [resolvable:$true] %s53_s28 }
  0x27   :  { %s1287_s12 = scalar_lea.hbm %s1639_s2, 16 }
  0x28   :  { %p1288_p2 = scmp.ne.s32.totalorder %s1639_s2, %s1287_s12  ;;  %p1291_p3 = scmp.lt.u32.totalorder %s1287_s12, %s1639_s2 }
  0x2a   :  { %p1293_p4 = pnand %p1291_p3, %p1288_p2 }
  0x2c   :  { %1296 = shalt.err (!%p1293_p4)
}
  0x2d   :  { %s1297_s9 = scalar_lea.vmem %s31_s26, 16  ;;  %s1301_s20 = scalar_lea.vmem %s31_s26, 32 }
  0x2e   :  { %p1298_p5 = scmp.ne.s32.totalorder %s31_s26, %s1297_s9  ;;  %p1302_p6 = scmp.lt.s32.totalorder %s31_s26, %s31_s26 }
  0x2f   :  { %p1303_p7 = scmp.lt.s32.totalorder %s1301_s20, %s1297_s9 }
  0x31   :  { %p1304_p8 = por %p1303_p7, %p1302_p6 }
  0x33   :  { %p1305_p9 = pnand %p1304_p8, %p1298_p5 }
  0x35   :  { %1308 = shalt.err (!%p1305_p9)
}
  0x36   :  { %33 = dma.hbm_to_vmem [thread:$0]  %s1639_s2, 16, %s31_s26, [#allocation3]  }
  0x37   :  { %s1309_s23 = scalar_lea.hbm %s1643_s6, 3072 }
  0x38   :  { %p1310_p10 = scmp.ne.s32.totalorder %s1643_s6, %s1309_s23  ;;  %p1313_p11 = scmp.lt.u32.totalorder %s1309_s23, %s1643_s6 }
  0x3a   :  { %p1315_p12 = pnand %p1313_p11, %p1310_p10 }
  0x3c   :  { %1318 = shalt.err (!%p1315_p12)
}
  0x3d   :  { %s1319_s30 = scalar_lea.vmem %s1496_s28, 3072  ;;  %p1324_p0 = scmp.lt.s32.totalorder %s1496_s28, %s1496_s28 }
  0x3e   :  { %p1320_p13 = scmp.ne.s32.totalorder %s1496_s28, %s1319_s30  ;;  %p1325_p1 = scmp.lt.s32.totalorder %s1319_s30, %s1319_s30 }
  0x40   :  { %p1326_p2 = por %p1325_p1, %p1324_p0 }
  0x42   :  { %p1327_p3 = pnand %p1326_p2, %p1320_p13 }
  0x44   :  { %1330 = shalt.err (!%p1327_p3)
}
  0x45   :  { %s1389_s2 = smov 192   ;;  %s1390_s26 = smov 12  }
  0x46   :  { %59 = dma.hbm_to_vmem [thread:$0]  %s1643_s6, 3072, %s1496_s28, [#allocation6], %s1389_s2, %s1389_s2, %s1390_s26  }
  0x47   :  { %s1391_s14 = smov [#allocation10]   ;;  %s1331_s20 = scalar_lea.hbm %s1647_s10, 1024 }
  0x48   :  { %s81_s15 = sshll.u32 %s1391_s14, 4  ;;  %p1332_p4 = scmp.ne.s32.totalorder %s1647_s10, %s1331_s20  ;;  %s82_s15 = int_to_ptr.vmem [resolvable:$true] %s81_s15 }
  0x49   :  { %p1335_p5 = scmp.lt.u32.totalorder %s1331_s20, %s1647_s10 }
  0x4b   :  { %p1337_p6 = pnand %p1335_p5, %p1332_p4 }
  0x4d   :  { %1340 = shalt.err (!%p1337_p6)
}
  0x4e   :  { %s1341_s23 = scalar_lea.vmem %s82_s15, 1024  ;;  %p1346_p8 = scmp.lt.s32.totalorder %s82_s15, %s82_s15 }
  0x4f   :  { %p1342_p7 = scmp.ne.s32.totalorder %s82_s15, %s1341_s23  ;;  %p1347_p9 = scmp.lt.s32.totalorder %s1341_s23, %s1341_s23 }
  0x51   :  { %p1348_p10 = por %p1347_p9, %p1346_p8 }
  0x53   :  { %p1349_p11 = pnand %p1348_p10, %p1342_p7 }
  0x55   :  { %1352 = shalt.err (!%p1349_p11)
}
  0x56   :  { %87 = dma.hbm_to_vmem [thread:$0]  %s1647_s10, 1024, %s82_s15, [#allocation9], %s1385_s5, %s1385_s5, %s1386_s18  }
  0x57   :  { %1375 = dma.done.wait [#allocation3], 16  }
  0x58   :  { %1376 = vsyncadd [#allocation3], 4294967280 }
  0x59   :  { %1377 = dma.done.wait [#allocation6], 3088  }
  0x5a   :  { %1378 = vsyncadd [#allocation6], 4294964208 }
  0x5b   :  { %1379 = dma.done.wait [#allocation9], 2048  }
  0x5c   :  { %1380 = vsyncadd [#allocation9], 4294965248  ;;  %v1392_v0 = vmov 0   ;;  %v104_v1 = vld [vmem:[%s1637_s0] sm:$0xff]  ;;  %v1393_v4 = vmov 0.0   ;;  %vm1394_vm0 = vmmov 0  }
  0x5d   :  { %1183 = vset.pattern.permute.xlu0 %v1392_v0  ;;  %v1184_v2 = vld [vmem:[%s1641_s4] sm:$0xff]   ;;  %1080 = vmatprep.subr.bf16.mxu0 %v1393_v4  ;;  %v990_v5 = vld [vmem:[#allocation2] ss:$0 sm:$0xff]  ;;  %v1395_v18 = vmov 683565275  }
  0x5e   :  { %108 = vperm.xlu0 %1183, %v104_v1   ;;  %v1185_v3 = vld [vmem:[%s1640_s3] sm:$0xff]   ;;  %1086 = vmatprep.subr.bf16.mxu1 %v1393_v4  ;;  %v1396_v20 = vmov 2475754826   ;;  %v1397_v23 = vmov 2131351028  }
  0x5f   :  { %1081 = vmatpush3.bf16.msra.mxu0 %v1184_v2  ;;  %1087 = vmatpush3.bf16.msra.mxu1 %v1185_v3  ;;  %v1398_v26 = vmov 2102212464   ;;  %v1399_v29 = vmov 920167782   ;;  %v1400_v32 = vmov 1326507024  }
  0x60   :  { %1082 = vmatprep.mubr.msk.bf16.mxu0 %vm1394_vm0, %v1393_v4  ;;  %1088 = vmatprep.mubr.msk.bf16.mxu1 %vm1394_vm0, %v1393_v4 }
  0x61   :  { %1118 = vmatprep.subr.bf16.mxu1 %v1393_v4 }
  0xdd   :  { %v109_v6 = vpop.permute.xlu0 %108 }
  0xde   :  { %v1559_v7 = vmul.f32 %v990_v5, %v109_v6 }
  0xe0   :  { %v121_v8 = vand.u32 2139095040, %v1559_v7  ;;  %v118_v12 = vand.u32 2147483647, %v1559_v7  ;;  %vm120_vm8 = vcmp.lt.s32.totalorder %v1559_v7, 0 }
  0xe2   :  { %v122_v9 = vshrl.u32 %v121_v8, 23  ;;  %v125_v15 = vand.u32 8388607, %v118_v12  ;;  %vm119_vm9 = vcmp.le.f32.partialorder %v118_v12, 0.7853982 }
  0xe4   :  { %v991_v10 = vadd.s32 4294967169, %v122_v9  ;;  %v126_v34 = vor.u32 8388608, %v125_v15 }
  0xe6   :  { %v128_v11 = vadd.s32 1, %v991_v10  ;;  %v166_v48 = vshll.u32 %v126_v34, 8 }
  0xe8   :  { %vm129_vm1 = vcmp.gt.s32.totalorder %v128_v11, 0 }
  0xe9   :  { %v130_v13 = vsel %vm129_vm1, %v128_v11, 0  ;;  %vm210_vm1 = vweird.f32 %v1559_v7 }
  0xea   :  { %v132_v14 = vand.u32 31, %v130_v13  ;;  %v131_v17 = vshrl.u32 %v130_v13, 5 }
  0xec   :  { %v133_v16 = vsub.s32 32, %v132_v14  ;;  %v135_v19 = vshll.u32 %v1395_v18, %v132_v14  ;;  %v138_v21 = vshll.u32 %v1396_v20, %v132_v14  ;;  %v141_v25 = vshll.u32 %v1397_v23, %v132_v14 }
  0xed   :  { %v144_v28 = vshll.u32 %v1398_v26, %v132_v14  ;;  %v147_v31 = vshll.u32 %v1399_v29, %v132_v14  ;;  %vm150_vm2 = vcmp.lt.s32.totalorder %v131_v17, 1  ;;  %vm153_vm3 = vcmp.lt.s32.totalorder %v131_v17, 4 }
  0xee   :  { %v136_v22 = vshrl.u32 %v1396_v20, %v133_v16  ;;  %v139_v24 = vshrl.u32 %v1397_v23, %v133_v16  ;;  %v142_v27 = vshrl.u32 %v1398_v26, %v133_v16  ;;  %v145_v30 = vshrl.u32 %v1399_v29, %v133_v16 }
  0xef   :  { %v148_v33 = vshrl.u32 %v1400_v32, %v133_v16  ;;  %v134_v43 = vshrl.u32 %v1395_v18, %v133_v16  ;;  %vm152_vm4 = vcmp.lt.s32.totalorder %v131_v17, 3  ;;  %vm151_vm5 = vcmp.lt.s32.totalorder %v131_v17, 2 }
  0xf0   :  { %v137_v35 = vor.u32 %v136_v22, %v135_v19  ;;  %v140_v36 = vor.u32 %v139_v24, %v138_v21  ;;  %v143_v37 = vor.u32 %v142_v27, %v141_v25  ;;  %v146_v38 = vor.u32 %v145_v30, %v144_v28 }
  0xf1   :  { %v149_v39 = vor.u32 %v148_v33, %v147_v31 }
  0xf2   :  { %v155_v40 = vsel %vm153_vm3, %v143_v37, 2102212464  ;;  %v158_v41 = vsel %vm150_vm2, %v137_v35, %v140_v36  ;;  %v162_v42 = vsel %vm150_vm2, %v140_v36, %v143_v37  ;;  %v159_v44 = vsel %vm153_vm3, %v146_v38, 920167782 }
  0xf3   :  { %v163_v45 = vsel %vm153_vm3, %v149_v39, 1326507024  ;;  %v160_v46 = vsel %vm152_vm4, %v143_v37, %v159_v44  ;;  %v154_v49 = vsel %vm150_vm2, %v134_v43, %v137_v35  ;;  %v156_v50 = vsel %vm152_vm4, %v140_v36, %v155_v40 }
  0xf4   :  { %v164_v47 = vsel %vm152_vm4, %v146_v38, %v163_v45  ;;  %v161_v51 = vsel %vm151_vm5, %v158_v41, %v160_v46  ;;  %v157_v57 = vsel %vm151_vm5, %v154_v49, %v156_v50  ;;  %vm337_vm2 = vcmask 130048   ;;  %v1188_v45 = vld [vmem:[#allocation7 + $0x4] ss:$12 sps:$4 sm:$0xff]   ;;  %v1186_v46 = vld [vmem:[#allocation7] ss:$12 sps:$4 sm:$0xff]  }
  0xf5   :  { %v165_v52 = vsel %vm151_vm5, %v162_v42, %v164_v47  ;;  %v1568_v55 = vmul.u32.u64.low %v166_v48, %v161_v51  ;;  %v1569_v56 = vmul.u32.u64.high %v166_v48, %v161_v51, %v1568_v55  ;;  %v173_v59 = vmul.u32 %v166_v48, %v157_v57  ;;  %626 = vmatprep.subr.bf16.mxu0 %v1188_v45  ;;  %v1189_v47 = vld [vmem:[#allocation7 + $0x18] ss:$12 sps:$4 sm:$0xff]   ;;  %v1192_v49 = vld [vmem:[#allocation7 + $0x30] ss:$12 sps:$4 sm:$0xff]   ;;  %v1195_v51 = vld [vmem:[#allocation7 + $0x48] ss:$12 sps:$4 sm:$0xff]  }
  0xf6   :  { %v1565_v53 = vmul.u32.u64.low %v166_v48, %v165_v52  ;;  %v1566_v54 = vmul.u32.u64.high %v166_v48, %v165_v52, %v1565_v53  ;;  %v1194_v48 = vld [vmem:[#allocation7 + $0x34] ss:$12 sps:$4 sm:$0xff]   ;;  %v1197_v50 = vld [vmem:[#allocation7 + $0x4c] ss:$12 sps:$4 sm:$0xff]  }
  0xf7   :  { %v176_v58 = vadd.s32 1, %v1569_v56  ;;  %v1198_v52 = vld [vmem:[#allocation7 + $0x60] ss:$12 sps:$4 sm:$0xff]   ;;  %v1203_v53 = vld [vmem:[#allocation7 + $0x7c] ss:$12 sps:$4 sm:$0xff]  }
  0xf8   :  { %vm175_vm6 = vc.u32 %v1566_v54, %v1568_v55  ;;  %v174_v10 = vadd.s32 %v1568_v55, %v1566_v54  ;;  %v1201_v54 = vld [vmem:[#allocation7 + $0x78] ss:$12 sps:$4 sm:$0xff]   ;;  %v1206_v55 = vld [vmem:[#allocation7 + $0x94] ss:$12 sps:$4 sm:$0xff]  }
  0xf9   :  { %v177_v60 = vsel %vm175_vm6, %v176_v58, %v1569_v56  ;;  %v1204_v56 = vld [vmem:[#allocation7 + $0x90] ss:$12 sps:$4 sm:$0xff]   ;;  %v1209_v57 = vld [vmem:[#allocation7 + $0xac] ss:$12 sps:$4 sm:$0xff]   ;;  %v1207_v58 = vld [vmem:[#allocation7 + $0xa8] ss:$12 sps:$4 sm:$0xff]  }
  0xfa   :  { %v178_v61 = vadd.s32 %v177_v60, %v173_v59 }
  0xfc   :  { %v179_v62 = vadd.s32 536870912, %v178_v61 }
  0xfe   :  { %v180_v63 = vshrl.u32 %v179_v62, 30 }
 0x100   :  { %v181_v1 = vshll.u32 %v180_v63, 30  ;;  %v204_v23 = vsub.s32 4, %v180_v63 }
 0x102   :  { %v182_v2 = vsub.s32 %v178_v61, %v181_v1  ;;  %v205_v26 = vsel %vm120_vm8, %v204_v23, %v180_v63  ;;  %v1003_v61 = vld [vmem:[#allocation5] ss:$0 sm:$0xff]  ;;  %v1212_v23 = vld [vmem:[#allocation7 + $0x38] ss:$12 sps:$4 sm:$0xff]  }
 0x103   :  { %v207_v28 = vsel %vm119_vm9, 0, %v205_v26  ;;  %v1215_v26 = vld [vmem:[#allocation7 + $0x80] ss:$12 sps:$4 sm:$0xff]  }
 0x104   :  { %v184_v3 = vsub.s32 0, %v182_v2  ;;  %v211_v29 = vadd.s32 3, %v207_v28  ;;  %v318_v30 = vand.u32 3, %v207_v28  ;;  %v1217_v28 = vld [vmem:[#allocation7 + $0xb0] ss:$12 sps:$4 sm:$0xff]  }
 0x106   :  { %v992_v5 = vmin.u32 %v184_v3, %v182_v2  ;;  %v212_v31 = vand.u32 3, %v211_v29  ;;  %vm323_vm10 = vcmp.eq.s32.totalorder %v318_v30, 2  ;;  %vm320_vm12 = vcmp.eq.s32.totalorder %v318_v30, 0  ;;  %v1218_v29 = vld [vmem:[%s1645_s8] sm:$0xff]  }
 0x107   :  { %vm319_vm14 = vcmp.lt.s32.totalorder %v318_v30, 2  ;;  %v707_v30 = vld [vmem:[%s1638_s1] sm:$0xff] }
 0x108   :  { %v186_v6 = vclz %v992_v5  ;;  %vm217_vm11 = vcmp.eq.s32.totalorder %v212_v31, 2  ;;  %vm214_vm13 = vcmp.eq.s32.totalorder %v212_v31, 0  ;;  %vm213_vm15 = vcmp.lt.s32.totalorder %v212_v31, 2 }
 0x109   :  { %v708_v31 = vpack.c.bf16 %v707_v30, %v707_v30 }
 0x10a   :  { %v993_v8 = vadd.s32 4294967294, %v186_v6 }
 0x10c   :  { %vm994_vm7 = vcmp.lt.s32.totalorder %v993_v8, 0 }
 0x10d   :  { %v189_v9 = vsel %vm994_vm7, 0, %v993_v8 }
 0x10e   :  { %v190_v11 = vsub.s32 32, %v189_v9  ;;  %v194_v13 = vsub.s32 4294967266, %v189_v9  ;;  %v191_v14 = vshll.u32 %v182_v2, %v189_v9 }
 0x110   :  { %v192_v15 = vshrl.u32 %v174_v10, %v190_v11  ;;  %v195_v16 = vadd.s32 127, %v194_v13 }
 0x112   :  { %v193_v17 = vor.u32 %v192_v15, %v191_v14  ;;  %v196_v18 = vshll.u32 %v195_v16, 23 }
 0x114   :  { %v197_v19 = vor.u32 4788187, %v196_v18  ;;  %v200_v21 = vcvt.s32.f32 %v193_v17 }
 0x116   :  { %v198_v20 = vand.u32 2147483647, %v197_v19 }
 0x118   :  { %v201_v22 = vmul.f32 %v200_v21, %v198_v20  ;;  %v1210_v20 = vld [vmem:[#allocation7 + $0x8] ss:$12 sps:$4 sm:$0xff]  }
 0x11a   :  { %v202_v24 = vxor.u32 2147483648, %v201_v22 }
 0x11c   :  { %v203_v25 = vsel %vm120_vm8, %v202_v24, %v201_v22  ;;  %v1211_v22 = vld [vmem:[#allocation7 + $0x20] ss:$12 sps:$4 sm:$0xff]   ;;  %v1213_v24 = vld [vmem:[#allocation7 + $0x50] ss:$12 sps:$4 sm:$0xff]  }
 0x11d   :  { %v206_v27 = vsel %vm119_vm9, %v1559_v7, %v203_v25  ;;  %v1191_v7 = vld [vmem:[#allocation7 + $0x1c] ss:$12 sps:$4 sm:$0xff]  }
 0x11e   :  { %1235 = vcosq.f32 %v206_v27  ;;  %v1214_v25 = vld [vmem:[#allocation7 + $0x68] ss:$12 sps:$4 sm:$0xff]  }
 0x11f   :  { %1237 = vsinq.f32 %v206_v27  ;;  %v1216_v27 = vld [vmem:[#allocation7 + $0x98] ss:$12 sps:$4 sm:$0xff]  }
 0x128   :  { %v1236_v32 = vpop.eup %1235 }
 0x129   :  { %v1238_v33 = vpop.eup %1237  ;;  %v218_v34 = vxor.u32 2147483648, %v1236_v32 }
 0x12a   :  { %v215_v35 = vxor.u32 2147483648, %v1238_v33 }
 0x12b   :  { %v325_v36 = vsel %vm323_vm10, %v218_v34, %v1238_v33  ;;  %v219_v12 = vsel %vm217_vm11, %v218_v34, %v1238_v33  ;;  %v1220_v33 = vld [vmem:[#allocation8 + $0x8] sm:$0xff]   ;;  %v1221_v34 = vld [vmem:[#allocation8 + $0x10] sm:$0xff]  }
 0x12c   :  { %v322_v37 = vsel %vm320_vm12, %v1236_v32, %v215_v35  ;;  %v216_v38 = vsel %vm214_vm13, %v1236_v32, %v215_v35  ;;  %v1219_v32 = vld [vmem:[#allocation8] sm:$0xff]   ;;  %v1222_v35 = vld [vmem:[#allocation8 + $0x18] sm:$0xff]  }
 0x12d   :  { %v326_v39 = vsel %vm319_vm14, %v322_v37, %v325_v36  ;;  %v220_v40 = vsel %vm213_vm15, %v216_v38, %v219_v12  ;;  %v1223_v36 = vld [vmem:[#allocation8 + $0x20] sm:$0xff]   ;;  %v1224_v12 = vld [vmem:[#allocation8 + $0x28] sm:$0xff]   ;;  %v1225_v37 = vld [vmem:[#allocation8 + $0x30] sm:$0xff]  }
 0x12e   :  { %v327_v41 = vsel %vm210_vm1, nan, %v326_v39  ;;  %v221_v42 = vsel %vm210_vm1, nan, %v220_v40  ;;  %v1226_v38 = vld [vmem:[#allocation8 + $0x38] sm:$0xff]  }
 0x12f   :  { %v328_v43 = vpack.c.bf16 %v327_v41, %v327_v41  ;;  %v222_v44 = vpack.c.bf16 %v221_v42, %v221_v42 }
 0x131   :  { %1083 = vmatmul.mubr.msk.bf16.vlgmr.msra.gmra.mrb[0].mxu0 %vm337_vm2, %v328_v43  ;;  %1089 = vmatmul.mubr.msk.bf16.vlgmr.msra.gmra.mrb[0].mxu1 %vm337_vm2, %v222_v44  ;;  %v483_v43 = vlaneseq }
 0x132   :  { %658 = vmatprep.mubr.bf16.mxu0 %v1392_v0  ;;  %1134 = vmatprep.mubr.msk.bf16.mxu1 %vm1394_vm0, %v1393_v4  ;;  %v1200_v0 = vld [vmem:[#allocation7 + $0x64] ss:$12 sps:$4 sm:$0xff]  }
 0x133   :  { %627 = vmatpush1.bf16.msra.mxu0 %v1186_v46  ;;  %1119 = vmatpush3.bf16.msra.mxu1 %v1219_v32  ;;  %v484_v44 = vshrl.u32 %v483_v43, 7  ;;  %v481_v46 = vld [vmem:[%s1644_s7] sm:$0x7]  ;;  %s1401_s7 = smov [#allocation11]  }
 0x134   :  { %628 = vmatprep.subr.bf16.mxu0 %v1191_v7  ;;  %1120 = vmatprep.subr.bf16.mxu1 %v1393_v4  ;;  %s979_s18 = sshll.u32 %s1401_s7, 4  ;;  %s980_s18 = int_to_ptr.vmem [resolvable:$true] %s979_s18 }
 0x135   :  { %v485_v45 = vsub.s32 0, %v484_v44  ;;  %s1353_s2 = scalar_lea.vmem %s980_s18, 128  ;;  %p1358_p13 = scmp.lt.s32.totalorder %s980_s18, %s980_s18 }
 0x136   :  { %p1354_p12 = scmp.ne.s32.totalorder %s980_s18, %s1353_s2  ;;  %p1359_p0 = scmp.lt.s32.totalorder %s1353_s2, %s1353_s2 }
 0x137   :  { %629 = vmatpush1.bf16.msra.mxu0 %v1189_v47  ;;  %1121 = vmatpush3.bf16.msra.mxu1 %v1220_v33 }
 0x138   :  { %630 = vmatprep.subr.bf16.mxu0 %v1194_v48  ;;  %1122 = vmatprep.subr.bf16.mxu1 %v1393_v4  ;;  %p1360_p1 = por %p1359_p0, %p1358_p13 }
 0x13a   :  { %p1361_p2 = pnand %p1360_p1, %p1354_p12 }
 0x13b   :  { %631 = vmatpush1.bf16.msra.mxu0 %v1192_v49  ;;  %1123 = vmatpush3.bf16.msra.mxu1 %v1221_v34  ;;  %v486_v49 = vrot.slane %v481_v46, %v485_v45 }
 0x13c   :  { %632 = vmatprep.subr.bf16.mxu0 %v1197_v50  ;;  %1124 = vmatprep.subr.bf16.mxu1 %v1393_v4 }
 0x13f   :  { %633 = vmatpush1.bf16.msra.mxu0 %v1195_v51  ;;  %1125 = vmatpush3.bf16.msra.mxu1 %v1222_v35 }
 0x140   :  { %634 = vmatprep.subr.bf16.mxu0 %v1200_v0  ;;  %1126 = vmatprep.subr.bf16.mxu1 %v1393_v4 }
 0x143   :  { %635 = vmatpush1.bf16.msra.mxu0 %v1198_v52  ;;  %1127 = vmatpush3.bf16.msra.mxu1 %v1223_v36 }
 0x144   :  { %636 = vmatprep.subr.bf16.mxu0 %v1203_v53  ;;  %1128 = vmatprep.subr.bf16.mxu1 %v1393_v4 }
 0x147   :  { %637 = vmatpush1.bf16.msra.mxu0 %v1201_v54  ;;  %1129 = vmatpush3.bf16.msra.mxu1 %v1224_v12 }
 0x148   :  { %638 = vmatprep.subr.bf16.mxu0 %v1206_v55  ;;  %1130 = vmatprep.subr.bf16.mxu1 %v1393_v4 }
 0x14b   :  { %639 = vmatpush1.bf16.msra.mxu0 %v1204_v56  ;;  %1131 = vmatpush3.bf16.msra.mxu1 %v1225_v37 }
 0x14c   :  { %640 = vmatprep.subr.bf16.mxu0 %v1209_v57  ;;  %1132 = vmatprep.subr.bf16.mxu1 %v1393_v4  ;;  %v1227_v57 = vld [vmem:[#allocation10] sm:$0xff]  }
 0x14f   :  { %641 = vmatpush1.bf16.msra.mxu0 %v1207_v58  ;;  %1133 = vmatpush3.bf16.msra.mxu1 %v1226_v38 }
 0x150   :  { %1092 = vmatprep.subr.bf16.mxu0 %v1393_v4  ;;  %1138 = vmatprep.subr.bf16.mxu1 %v1393_v4 }
 0x204   :  { %v375_v59 = vpop.f32.mrb[0].mxu0  ;;  %v424_v60 = vpop.f32.mrb[0].mxu1 }
 0x205   :  { %v425_v62 = vadd.f32 %v424_v60, %v375_v59  ;;  %v1084_v63 = vpop.f32.mrb[1].mxu0  ;;  %v1090_v1 = vpop.f32.mrb[1].mxu1  ;;  %v1228_v59 = vld [vmem:[#allocation10 + $0x8] sm:$0xff]   ;;  %v1229_v60 = vld [vmem:[#allocation10 + $0x10] sm:$0xff]  }
 0x206   :  { %v378_v2 = vpop.f32.mrb[2].mxu0  ;;  %v427_v3 = vpop.f32.mrb[2].mxu1  ;;  %v1232_v63 = vld [vmem:[#allocation10 + $0x28] sm:$0xff]   ;;  %v1233_v1 = vld [vmem:[#allocation10 + $0x30] sm:$0xff]  }
 0x207   :  { %v437_v5 = vadd.f32 %v1003_v61, %v425_v62  ;;  %v1085_v6 = vpop.f32.mrb[3].mxu0  ;;  %v1091_v8 = vpop.f32.mrb[3].mxu1  ;;  %v1230_v61 = vld [vmem:[#allocation10 + $0x18] sm:$0xff]   ;;  %v1231_v62 = vld [vmem:[#allocation10 + $0x20] sm:$0xff]   ;;  %v489_v3 = vsub.s32 1, %v484_v44 }
 0x208   :  { %v1234_v2 = vld [vmem:[#allocation10 + $0x38] sm:$0xff]  }
 0x209   :  { %v438_v9 = vmin.f32 %v437_v5, 20.0 }
 0x20b   :  { %v439_v10 = vmul.f32 1.442695, %v438_v9 }
 0x20d   :  { %1239 = vpow2.f32 %v439_v10 }
 0x217   :  { %v1240_v11 = vpop.eup %1239 }
 0x218   :  { %v441_v13 = vadd.f32 1.0, %v1240_v11 }
 0x21a   :  { %v442_v14 = vmul.f32 %v441_v13, %v441_v13 }
 0x21c   :  { %v445_v15 = vadd.f32 1.0, %v442_v14  ;;  %v1004_v16 = vadd.f32 -1.0, %v442_v14 }
 0x21e   :  { %1241 = vrcp.f32 %v445_v15  ;;  %v444_v17 = vmul.f32 %v1004_v16, %v437_v5  ;;  %v490_v5 = vrot.slane %v481_v46, %v489_v3  ;;  %v493_v16 = vsub.s32 2, %v484_v44 }
 0x228   :  { %v1242_v18 = vpop.eup %1241 }
 0x229   :  { %v447_v19 = vmul.f32 %v1242_v18, %v444_v17  ;;  %v494_v17 = vrot.slane %v481_v46, %v493_v16 }
 0x22b   :  { %v448_v21 = vpack.c.bf16 %v447_v19, %v447_v19 }
 0x22d   :  { %659 = vmatmul.mubr.bf16.vlgmr.msra.gmra.mrb[4].mxu0 %v448_v21 }
 0x22e   :  { %1093 = vmatpush3.bf16.msra.mxu0 %v1210_v20  ;;  %1108 = vmatprep.mubr.msk.bf16.mxu0 %vm1394_vm0, %v1393_v4 }
 0x22f   :  { %1094 = vmatprep.subr.bf16.mxu0 %v1393_v4 }
 0x232   :  { %1095 = vmatpush3.bf16.msra.mxu0 %v1211_v22 }
 0x233   :  { %1096 = vmatprep.subr.bf16.mxu0 %v1393_v4 }
 0x236   :  { %1097 = vmatpush3.bf16.msra.mxu0 %v1212_v23 }
 0x237   :  { %1098 = vmatprep.subr.bf16.mxu0 %v1393_v4 }
 0x23a   :  { %1099 = vmatpush3.bf16.msra.mxu0 %v1213_v24 }
 0x23b   :  { %1100 = vmatprep.subr.bf16.mxu0 %v1393_v4 }
 0x23e   :  { %1101 = vmatpush3.bf16.msra.mxu0 %v1214_v25 }
 0x23f   :  { %1102 = vmatprep.subr.bf16.mxu0 %v1393_v4 }
 0x242   :  { %1103 = vmatpush3.bf16.msra.mxu0 %v1215_v26 }
 0x243   :  { %1104 = vmatprep.subr.bf16.mxu0 %v1393_v4 }
 0x246   :  { %1105 = vmatpush3.bf16.msra.mxu0 %v1216_v27 }
 0x247   :  { %1106 = vmatprep.subr.bf16.mxu0 %v1393_v4 }
 0x24a   :  { %1107 = vmatpush3.bf16.msra.mxu0 %v1217_v28 }
 0x24b   :  { %1112 = vmatprep.subr.bf16.mxu0 %v1393_v4 }
 0x24d   :  { %1109 = vmatmul.mubr.bf16.vlgmr.msra.gmra.mrb[8].mxu0 %v448_v21 }
 0x24e   :  { %1113 = vmatpush3.bf16.msra.mxu0 %v1218_v29  ;;  %1114 = vmatprep.mubr.msk.bf16.mxu0 %vm1394_vm0, %v1393_v4 }
 0x255   :  { %1115 = vmatmul.mubr.msk.bf16.vlgmr.msra.gmra.mrb[12].mxu0 %vm337_vm2, %v708_v31 }
 0x300   :  { %v660_v39 = vpop.f32.mrb[4].mxu0 }
 0x301   :  { %v662_v40 = vpop.f32.mrb[5].mxu0  ;;  %v661_v51 = vadd.f32 %v660_v39, %v486_v49 }
 0x302   :  { %v664_v41 = vpop.f32.mrb[6].mxu0  ;;  %v663_v6 = vadd.f32 %v662_v40, %v490_v5 }
 0x303   :  { %v665_v42 = vpop.f32.mrb[7].mxu0 }
 0x320   :  { %v701_v7 = vpop.f32.mrb[8].mxu0 }
 0x321   :  { %v1110_v47 = vpop.f32.mrb[9].mxu0  ;;  %v702_v18 = vadd.f32 %v701_v7, %v494_v17 }
 0x322   :  { %v704_v48 = vpop.f32.mrb[10].mxu0 }
 0x323   :  { %v1111_v50 = vpop.f32.mrb[11].mxu0 }
 0x328   :  { %v754_v0 = vpop.f32.mrb[12].mxu0 }
 0x329   :  { %v755_v52 = vadd.f32 %v754_v0, %v661_v51  ;;  %v1116_v53 = vpop.f32.mrb[13].mxu0 }
 0x32a   :  { %v757_v54 = vpop.f32.mrb[14].mxu0 }
 0x32b   :  { %v760_v55 = vmax.f32 %v755_v52, 0.0  ;;  %v1117_v56 = vpop.f32.mrb[15].mxu0 }
 0x32d   :  { %v761_v58 = vpack.c.bf16 %v760_v55, %v760_v55 }
 0x32f   :  { %1135 = vmatmul.mubr.bf16.vlgmr.msra.gmra.mrb[4].mxu1 %v761_v58 }
 0x330   :  { %1139 = vmatpush3.bf16.msra.mxu1 %v1227_v57  ;;  %1154 = vmatprep.mubr.msk.bf16.mxu1 %vm1394_vm0, %v1393_v4 }
 0x331   :  { %1140 = vmatprep.subr.bf16.mxu1 %v1393_v4 }
 0x334   :  { %1141 = vmatpush3.bf16.msra.mxu1 %v1228_v59 }
 0x335   :  { %1142 = vmatprep.subr.bf16.mxu1 %v1393_v4 }
 0x338   :  { %1143 = vmatpush3.bf16.msra.mxu1 %v1229_v60 }
 0x339   :  { %1144 = vmatprep.subr.bf16.mxu1 %v1393_v4 }
 0x33c   :  { %1145 = vmatpush3.bf16.msra.mxu1 %v1230_v61 }
 0x33d   :  { %1146 = vmatprep.subr.bf16.mxu1 %v1393_v4 }
 0x340   :  { %1147 = vmatpush3.bf16.msra.mxu1 %v1231_v62 }
 0x341   :  { %1148 = vmatprep.subr.bf16.mxu1 %v1393_v4 }
 0x344   :  { %1149 = vmatpush3.bf16.msra.mxu1 %v1232_v63 }
 0x345   :  { %1150 = vmatprep.subr.bf16.mxu1 %v1393_v4 }
 0x348   :  { %1151 = vmatpush3.bf16.msra.mxu1 %v1233_v1 }
 0x349   :  { %1152 = vmatprep.subr.bf16.mxu1 %v1393_v4 }
 0x34c   :  { %1153 = vmatpush3.bf16.msra.mxu1 %v1234_v2 }
 0x402   :  { %v860_v8 = vpop.f32.mrb[4].mxu1 }
 0x403   :  { %v861_v9 = vadd.f32 %v860_v8, %v663_v6  ;;  %v1136_v10 = vpop.f32.mrb[5].mxu1 }
 0x404   :  { %v863_v11 = vpop.f32.mrb[6].mxu1 }
 0x405   :  { %v866_v13 = vmax.f32 %v861_v9, 0.0  ;;  %v1137_v14 = vpop.f32.mrb[7].mxu1 }
 0x407   :  { %v867_v15 = vpack.c.bf16 %v866_v13, %v866_v13 }
 0x409   :  { %1155 = vmatmul.mubr.bf16.vlgmr.msra.gmra.mrb[8].mxu1 %v867_v15 }
 0x4dc   :  { %v966_v19 = vpop.f32.mrb[8].mxu1 }
 0x4dd   :  { %v967_v4 = vadd.f32 %v966_v19, %v702_v18  ;;  %v1156_v20 = vpop.f32.mrb[9].mxu1 }
 0x4de   :  { %v969_v21 = vpop.f32.mrb[10].mxu1 }
 0x4df   :  { %972 = vst [vmem:[#allocation11] sm:$0xff] %v967_v4  ;;  %v1157_v22 = vpop.f32.mrb[11].mxu1 }
 0x4e0   :  { %1364 = shalt.err (!%p1361_p2)
}
 0x4e1   :  { %s1365_s13 = scalar_lea.hbm %s1648_s11, 128 }
 0x4e2   :  { %p1366_p3 = scmp.ne.s32.totalorder %s1648_s11, %s1365_s13  ;;  %p1369_p4 = scmp.lt.u32.totalorder %s1365_s13, %s1648_s11 }
 0x4e4   :  { %p1371_p5 = pnand %p1369_p4, %p1366_p3 }
 0x4e6   :  { %1374 = shalt.err (!%p1371_p5)
}
 0x4e7   :  { %982 = dma.vmem_to_hbm [thread:$0]  %s980_s18, 128, %s1648_s11, [#allocation4]  }
 0x4e8   :  { %1381 = dma.done.wait [#allocation4], 128  }
 0x4e9   :  { %1382 = vsyncadd [#allocation4], 4294967168 }
 0x4ea   :  { %986 = vsyncpa [#allocation3], 1 }
 0x4eb   :  { %987 = vsyncpa [#allocation6], 1 }
 0x4ec   :  { %988 = vsyncpa [#allocation9], 1 }
 0x4ed   :  { %989 = vsyncpa [#allocation4], 1 }

</bundles_post_ra>
